<compile_context>
chip_gen: v6e
topology: v6e:2x2x1
jax: 0.10.0
libtpu: 0.0.40
codegen_flags: <defaults>
</compile_context>

<pallas_src>
import functools

import jax
import jax.numpy as jnp
from jax import lax
from jax.experimental import pallas as pl
from jax.experimental.pallas import tpu as pltpu


def _focal_loss_kernel(valid_ref, logits_ref, targets_ref, out_ref, *,
                       alpha, gamma, label_smoothing, tile_b):
    i = pl.program_id(0)

    x = logits_ref[...].astype(jnp.float32)                  # (TB, C)
    tb, c = x.shape

    # Numerically stable log-softmax pieces.
    m = jnp.max(x, axis=-1, keepdims=True)                   # XLU reduce 1
    shifted = x - m
    lse = jnp.log(jnp.sum(jnp.exp(shifted), axis=-1,         # XLU reduce 2
                          keepdims=True))

    # Fused label-smoothed CE: per-lane smoothing weight, single weighted
    # reduce (XLU reduce 3).  Algebraically identical to
    #   -[(1-ls)*(shifted[tgt]-lse) + (ls/C)*(sum(shifted)-C*lse)]
    ls = label_smoothing
    uniform = ls / c
    col = lax.broadcasted_iota(jnp.int32, (tb, c), 1)
    w = jnp.where(col == targets_ref[...], (1.0 - ls) + uniform, uniform)
    ce = lse - jnp.sum(w * shifted, axis=-1, keepdims=True)  # (TB, 1)

    pt = jnp.exp(-ce)
    one_minus_pt = 1.0 - pt

    g = float(gamma)
    if g == int(g) and 0 <= int(g) <= 4:
        # Integer-gamma fast path: VPU multiplies, no EUP pow (safe for pt>1).
        wgt = jnp.ones_like(one_minus_pt)
        for _ in range(int(g)):
            wgt = wgt * one_minus_pt
    else:
        # pt can round slightly above 1 -> negative base -> NaN pow; clamp.
        wgt = jnp.maximum(one_minus_pt, 0.0) ** g

    focal = alpha * wgt * ce                                  # (TB, 1)

    # Zero rows past the true batch (valid row count lives in SMEM prefetch).
    row = lax.broadcasted_iota(jnp.int32, (tb, 1), 0) + i * tile_b
    focal = jnp.where(row < valid_ref[0], focal, 0.0)

    # Lane-dense per-tile partial sum: this tile owns one (1, 8, 128) block.
    out_ref[...] = jnp.full(out_ref.shape, jnp.sum(focal), dtype=jnp.float32)


def _tpu_vmem_bytes():
    try:
        return int(pltpu.get_tpu_info().vmem_capacity_bytes)
    except Exception:
        return 64 * 1024 * 1024      # conservative (v7x-like) fallback


def _pick_tile_b(batch, num_classes, itemsize, target_block_bytes):
    """Batch tile: ~target_block_bytes per step, multiple of 8, >=2 tiles
    when the batch allows (so both v7x TensorCores get work)."""
    # Per-row VMEM bytes: logits row + lane-padded (128-lane) int32 target row.
    per_row = num_classes * itemsize + 128 * 4
    rows = max(8, target_block_bytes // per_row)
    batch_pad8 = -(-batch // 8) * 8
    rows = min(rows, batch_pad8)
    if rows >= batch_pad8 and batch_pad8 >= 16:
        # Whole batch would fit in one tile: split in two for the parallel axis.
        rows = -(-(batch_pad8 // 2) // 8) * 8
    return max(8, (int(rows) // 8) * 8)


def focal_loss(logits, targets, *, alpha=0.25, gamma=2.0, label_smoothing=0.1,
               tile_b=None):
    """logits: (B, C) float, targets: (B,) int -> scalar mean focal loss."""
    B, C = logits.shape

    vmem_cap = _tpu_vmem_bytes()
    if vmem_cap >= 100 * 1024 * 1024:            # v5e / v6e: 128 MiB VMEM
        target_block_bytes = 6 * 1024 * 1024
        vmem_limit = 96 * 1024 * 1024
    else:                                        # v7x (64 MiB) / unknown
        target_block_bytes = 3 * 1024 * 1024
        vmem_limit = 48 * 1024 * 1024

    if tile_b is None:
        tile_b = _pick_tile_b(B, C, logits.dtype.itemsize, target_block_bytes)
    tile_b = max(8, (int(tile_b) // 8) * 8)      # f32 sublane constraint

    num_tiles = -(-B // tile_b)
    B_pad = num_tiles * tile_b

    x = logits                                   # keep HBM dtype (bf16 OK)
    t = targets.astype(jnp.int32).reshape(B, 1)
    if B_pad != B:
        x = jnp.pad(x, ((0, B_pad - B), (0, 0)))
        t = jnp.pad(t, ((0, B_pad - B), (0, 0)))

    # Scalar-prefetch arg: true batch size (no recompile per ragged batch).
    valid = jnp.array([B], dtype=jnp.int32)

    kernel = functools.partial(
        _focal_loss_kernel,
        alpha=float(alpha), gamma=float(gamma),
        label_smoothing=float(label_smoothing), tile_b=tile_b,
    )

    partials = pl.pallas_call(
        kernel,
        out_shape=jax.ShapeDtypeStruct((num_tiles, 8, 128), jnp.float32),
        grid_spec=pltpu.PrefetchScalarGridSpec(
            num_scalar_prefetch=1,
            grid=(num_tiles,),
            in_specs=[
                pl.BlockSpec((tile_b, C), lambda i, valid: (i, 0)),
                pl.BlockSpec((tile_b, 1), lambda i, valid: (i, 0)),
            ],
            out_specs=pl.BlockSpec((1, 8, 128), lambda i, valid: (i, 0, 0)),
        ),
        compiler_params=pltpu.CompilerParams(
            dimension_semantics=("parallel",),
            vmem_limit_bytes=vmem_limit,
        ),
    )(valid, x, t)

    # Each tile's block is filled with its partial sum; finish the mean here.
    return jnp.sum(partials[:, 0, 0]) / B


def _focal_loss_ref(logits, targets, alpha=0.25, gamma=2.0, label_smoothing=0.1):
    log_probs = jax.nn.log_softmax(logits.astype(jnp.float32), axis=-1)
    c = logits.shape[-1]
    onehot = jax.nn.one_hot(targets, c, dtype=jnp.float32)
    smoothed = (1.0 - label_smoothing) * onehot + label_smoothing / c
    ce = -jnp.sum(smoothed * log_probs, axis=-1)
    pt = jnp.exp(-ce)
    return jnp.mean(alpha * (1.0 - pt) ** gamma * ce)


if __name__ == "__main__":
    key = jax.random.PRNGKey(0)
    k1, k2, k3, k4, k5, k6 = jax.random.split(key, 6)

    # Case 1: small, exact tile fit (8 samples, 32 classes), auto tiling.
    B, C = 8, 32
    logits = jax.random.normal(k1, (B, C), dtype=jnp.float32)
    targets = jax.random.randint(k2, (B,), 0, C, dtype=jnp.int32)
    loss = jax.block_until_ready(focal_loss(logits, targets))
    ref = _focal_loss_ref(logits, targets)
    assert jnp.allclose(loss, ref, rtol=1e-5, atol=1e-5), (loss, ref)

    # Case 2: ragged batch (20 rows, tile_b=8 -> padding + masking path).
    B2, C2 = 20, 32
    logits2 = jax.random.normal(k3, (B2, C2), dtype=jnp.float32)
    targets2 = jax.random.randint(k4, (B2,), 0, C2, dtype=jnp.int32)
    loss2 = jax.block_until_ready(focal_loss(logits2, targets2, tile_b=8))
    ref2 = _focal_loss_ref(logits2, targets2)
    assert jnp.allclose(loss2, ref2, rtol=1e-5, atol=1e-5), (loss2, ref2)

    # Case 3: bf16 logits, auto tiling (exercises >=2-tile megacore split and
    # fractional-gamma clamp path).
    B3, C3 = 64, 32
    logits3 = jax.random.normal(k5, (B3, C3), dtype=jnp.bfloat16)
    targets3 = jax.random.randint(k6, (B3,), 0, C3, dtype=jnp.int32)
    loss3 = jax.block_until_ready(
        focal_loss(logits3, targets3, gamma=1.5))
    ref3 = _focal_loss_ref(logits3, targets3, gamma=1.5)
    assert jnp.allclose(loss3, ref3, rtol=1e-4, atol=1e-4), (loss3, ref3)

    print("KERNEL_OK")
</pallas_src>

<mosaic_0001>
module attributes {stable_mosaic.version = 11 : i64} {
  func.func @_focal_loss_kernel(%arg0: i32, %arg1: memref<1xi32, #tpu.memory_space<smem>>, %arg2: memref<8x32xf32, #tpu.memory_space<vmem>>, %arg3: memref<8x1xi32, #tpu.memory_space<vmem>>, %arg4: memref<1x8x128xf32, #tpu.memory_space<vmem>>) attributes {dimension_semantics = [#tpu.dimension_semantics<parallel>], iteration_bounds = array<i64: 1>, scalar_prefetch = 1 : i64, scratch_operands = 0 : i64, tpu.core_type = #tpu.core_type<tc>, window_params = [{transform_indices = @transform_0, window_bounds = array<i64: 8, 32>}, {transform_indices = @transform_1, window_bounds = array<i64: 8, 1>}, {transform_indices = @transform_2, window_bounds = array<i64: 1, 8, 128>}]} {
    %c0 = arith.constant 0 : index
    %c0_0 = arith.constant 0 : index
    %0 = vector.load %arg2[%c0, %c0_0] : memref<8x32xf32, #tpu.memory_space<vmem>>, vector<8x32xf32>
    %cst = arith.constant dense<0xFF800000> : vector<8xf32>
    %1 = vector.multi_reduction <maximumf>, %0, %cst [1] : vector<8x32xf32> to vector<8xf32>
    %2 = vector.shape_cast %1 : vector<8xf32> to vector<8x1xf32>
    %3 = vector.broadcast %2 : vector<8x1xf32> to vector<8x32xf32>
    %4 = arith.subf %0, %3 : vector<8x32xf32>
    %5 = math.exp %4 : vector<8x32xf32>
    %cst_1 = arith.constant dense<0.000000e+00> : vector<8xf32>
    %6 = vector.multi_reduction <add>, %5, %cst_1 [1] : vector<8x32xf32> to vector<8xf32>
    %7 = vector.shape_cast %6 : vector<8xf32> to vector<8x1xf32>
    %8 = math.log %7 : vector<8x1xf32>
    %9 = tpu.iota {dimensions = array<i32: 1>} : vector<8x32xi32>
    %c0_2 = arith.constant 0 : index
    %c0_3 = arith.constant 0 : index
    %10 = vector.load %arg3[%c0_2, %c0_3] : memref<8x1xi32, #tpu.memory_space<vmem>>, vector<8x1xi32>
    %11 = vector.broadcast %10 : vector<8x1xi32> to vector<8x32xi32>
    %12 = arith.cmpi eq, %9, %11 : vector<8x32xi32>
    %cst_4 = arith.constant 0.903124988 : f32
    %cst_5 = arith.constant 3.125000e-03 : f32
    %13 = vector.broadcast %cst_4 : f32 to vector<8x32xf32>
    %14 = vector.broadcast %cst_5 : f32 to vector<8x32xf32>
    %15 = arith.select %12, %13, %14 : vector<8x32xi1>, vector<8x32xf32>
    %16 = arith.mulf %15, %4 : vector<8x32xf32>
    %cst_6 = arith.constant dense<0.000000e+00> : vector<8xf32>
    %17 = vector.multi_reduction <add>, %16, %cst_6 [1] : vector<8x32xf32> to vector<8xf32>
    %18 = vector.shape_cast %17 : vector<8xf32> to vector<8x1xf32>
    %19 = arith.subf %8, %18 : vector<8x1xf32>
    %cst_7 = arith.constant 0.000000e+00 : f32
    %20 = vector.broadcast %cst_7 : f32 to vector<8x1xf32>
    %21 = arith.subf %20, %19 : vector<8x1xf32>
    %22 = math.exp %21 : vector<8x1xf32>
    %cst_8 = arith.constant 1.000000e+00 : f32
    %23 = vector.broadcast %cst_8 : f32 to vector<8x1xf32>
    %24 = arith.subf %23, %22 : vector<8x1xf32>
    %cst_9 = arith.constant 1.000000e+00 : f32
    %25 = vector.broadcast %cst_9 : f32 to vector<8x1xf32>
    %26 = arith.mulf %25, %24 : vector<8x1xf32>
    %27 = arith.mulf %26, %24 : vector<8x1xf32>
    %cst_10 = arith.constant 2.500000e-01 : f32
    %28 = vector.broadcast %cst_10 : f32 to vector<8x1xf32>
    %29 = arith.mulf %28, %27 : vector<8x1xf32>
    %30 = arith.mulf %29, %19 : vector<8x1xf32>
    %31 = tpu.iota {dimensions = array<i32: 0>} : vector<8x1xi32>
    %c8_i32 = arith.constant 8 : i32
    %32 = arith.muli %arg0, %c8_i32 : i32
    %33 = vector.broadcast %32 : i32 to vector<8x1xi32>
    %34 = arith.addi %31, %33 : vector<8x1xi32>
    %c0_11 = arith.constant 0 : index
    %35 = memref.load %arg1[%c0_11] : memref<1xi32, #tpu.memory_space<smem>>
    %36 = vector.broadcast %35 : i32 to vector<8x1xi32>
    %37 = arith.cmpi slt, %34, %36 : vector<8x1xi32>
    %cst_12 = arith.constant 0.000000e+00 : f32
    %38 = vector.broadcast %cst_12 : f32 to vector<8x1xf32>
    %39 = arith.select %37, %30, %38 : vector<8x1xi1>, vector<8x1xf32>
    %40 = vector.shape_cast %39 : vector<8x1xf32> to vector<1x8x1xf32>
    %cst_13 = arith.constant dense<0.000000e+00> : vector<1xf32>
    %41 = vector.multi_reduction <add>, %40, %cst_13 [1, 2] : vector<1x8x1xf32> to vector<1xf32>
    %42 = vector.shape_cast %41 : vector<1xf32> to vector<1x1x1xf32>
    %43 = vector.extract %42[0, 0, 0] : f32 from vector<1x1x1xf32>
    %44 = vector.broadcast %43 : f32 to vector<1x8x128xf32>
    %c0_14 = arith.constant 0 : index
    %c0_15 = arith.constant 0 : index
    %c0_16 = arith.constant 0 : index
    %45 = vector.load %arg4[%c0_14, %c0_15, %c0_16] : memref<1x8x128xf32, #tpu.memory_space<vmem>>, vector<1x8x128xf32>
    tpu.vector_store %arg4[%c0_14, %c0_15, %c0_16], %44 {strides = array<i32>} : memref<1x8x128xf32, #tpu.memory_space<vmem>>, vector<1x8x128xf32>,
    return
  }
  func.func @transform_0(%arg0: i32, %arg1: memref<1xi32, #tpu.memory_space<smem>>) -> (i32, i32) {
    %c0_i32 = arith.constant 0 : i32
    %c0_i32_0 = arith.constant 0 : i32
    return %arg0, %c0_i32 : i32, i32
  }
  func.func @transform_1(%arg0: i32, %arg1: memref<1xi32, #tpu.memory_space<smem>>) -> (i32, i32) {
    %c0_i32 = arith.constant 0 : i32
    %c0_i32_0 = arith.constant 0 : i32
    return %arg0, %c0_i32 : i32, i32
  }
  func.func @transform_2(%arg0: i32, %arg1: memref<1xi32, #tpu.memory_space<smem>>) -> (i32, i32, i32) {
    %c0_i32 = arith.constant 0 : i32
    %c0_i32_0 = arith.constant 0 : i32
    %c0_i32_1 = arith.constant 0 : i32
    return %arg0, %c0_i32, %c0_i32_0 : i32, i32, i32
  }
}

</mosaic_0001>

<bundles_post_ra>
// kernel: tpu_custom_call.1
= control target key start
LH: loop header
LB: loop body
LE: loop exit
PB: predicated region body
PF: predicated region fallthrough
CT: control target
= control target key end

     0   :  { %vm15_vm0 = vcmask 261120   ;;  %s155_s0 = inlined_call_operand.<no memory space> [shape: s32[1], index: 0, kind: input, shape index: {}]   ;;  %s156_s1 = inlined_call_operand.vmem [shape: f32[8,32], index: 1, kind: input, shape index: {}]   ;;  %s157_s2 = inlined_call_operand.vmem [shape: s32[8,1], index: 2, kind: input, shape index: {}]   ;;  %s158_s3 = inlined_call_operand.hbm [shape: f32[1,8,128], index: 3, kind: output, shape index: {}]  }
   0x1   :  { %v14_v0 = vld [vmem:[%s156_s1] sm:$0xff] }
   0x2   :  { %9 = vsyncpa [#allocation5], 0  ;;  %v16_v1 = vsel %vm15_vm0, %v14_v0, -inf  ;;  %v117_v2 = vmov 0   ;;  %v29_v3 = vld [vmem:[%s157_s2] sm:$0xff]  ;;  %v27_v7 = vlaneseq  ;;  %v53_v27 = vstv %s155_s0  ;;  %s119_s16 = smov [#allocation4]  }
   0x3   :  { %88 = vset.pattern.permute.xlu0 %v117_v2  ;;  %v118_v10 = vmov 0.003125   ;;  %vm56_vm3 = vcmask 7168   ;;  %s75_s17 = sshll.u32 %s119_s16, 4  ;;  %s76_s17 = int_to_ptr.vmem [resolvable:$true] %s75_s17 }
   0x4   :  { %17 = vmax.xlane.f32.xlu0 %v16_v1  ;;  %v28_v8 = vand.u32 127, %v27_v7  ;;  %v48_v25 = vshrl.u32 %v27_v7, 7  ;;  %s95_s0 = scalar_lea.vmem %s76_s17, 128  ;;  %p100_p1 = scmp.lt.s32.totalorder %s76_s17, %s76_s17 }
   0x5   :  { %p96_p0 = scmp.ne.s32.totalorder %s76_s17, %s95_s0  ;;  %p101_p2 = scmp.lt.s32.totalorder %s95_s0, %s95_s0 }
   0x6   :  { %vm54_vm2 = vcmp.lt.s32.totalorder %v48_v25, %v53_v27 }
   0x7   :  { %p102_p3 = por %p101_p2, %p100_p1 }
   0x9   :  { %p103_p4 = pnand %p102_p3, %p96_p0 }
  0x1a   :  { %31 = vperm.xlu0 %88, %v29_v3  }
  0x8d   :  { %v18_v4 = vpop.xlane.xlu0 %17 }
  0x8e   :  { %v19_v5 = vsub.f32 %v14_v0, %v18_v4 }
  0x90   :  { %v20_v6 = vmul.f32 1.442695, %v19_v5 }
  0x92   :  { %89 = vpow2.f32 %v20_v6 }
  0x95   :  { %v32_v9 = vpop.permute.xlu0 %31 }
  0x96   :  { %vm33_vm1 = vcmp.eq.s32.totalorder %v28_v8, %v32_v9 }
  0x97   :  { %v34_v11 = vsel %vm33_vm1, 0.903125, %v118_v10 }
  0x98   :  { %v35_v14 = vmul.f32 %v34_v11, %v19_v5 }
  0x9a   :  { %v36_v15 = vsel %vm15_vm0, %v35_v14, 0.0 }
  0x9f   :  { %v90_v12 = vpop.eup %89 }
  0xa0   :  { %v22_v13 = vsel %vm15_vm0, %v90_v12, 0.0 }
  0xa1   :  { %23 = vadd.xlane.f32.xlu1 %v22_v13 }
  0xa5   :  { %37 = vadd.xlane.f32.xlu1 %v36_v15 }
 0x12a   :  { %v24_v16 = vpop.xlane.xlu1 %23 }
 0x12b   :  { %91 = vlog2.f32 %v24_v16 }
 0x12e   :  { %v38_v19 = vpop.xlane.xlu1 %37 }
 0x138   :  { %v92_v17 = vpop.eup %91 }
 0x139   :  { %v26_v18 = vmul.f32 0.6931472, %v92_v17 }
 0x13b   :  { %v39_v20 = vsub.f32 %v26_v18, %v38_v19 }
 0x13d   :  { %v40_v21 = vsub.f32 0.0, %v39_v20 }
 0x13f   :  { %v41_v22 = vmul.f32 1.442695, %v40_v21 }
 0x141   :  { %93 = vpow2.f32 %v41_v22 }
 0x14e   :  { %v94_v23 = vpop.eup %93 }
 0x14f   :  { %v43_v24 = vsub.f32 1.0, %v94_v23 }
 0x151   :  { %v44_v26 = vmul.f32 %v43_v24, %v43_v24 }
 0x153   :  { %v45_v28 = vmul.f32 0.25, %v44_v26 }
 0x155   :  { %v46_v29 = vmul.f32 %v45_v28, %v39_v20 }
 0x157   :  { %v55_v30 = vsel %vm54_vm2, %v46_v29, 0.0 }
 0x158   :  { %v57_v31 = vsel %vm56_vm3, %v55_v30, 0.0 }
 0x159   :  { %58 = vadd.xlane.f32.xlu1 %v57_v31 }
 0x1e2   :  { %v59_v32 = vpop.xlane.xlu1 %58 }
 0x1e3   :  { %v60_v33 = vrot.slane %v59_v32, 4 }
 0x1e5   :  { %v61_v34 = vadd.f32 %v60_v33, %v59_v32 }
 0x1e7   :  { %v62_v35 = vrot.slane %v61_v34, 2 }
 0x1e9   :  { %v63_v36 = vadd.f32 %v62_v35, %v61_v34 }
 0x1eb   :  { %v64_v37 = vrot.slane %v63_v36, 1 }
 0x1ed   :  { %v65_v38 = vadd.f32 %v64_v37, %v63_v36 }
 0x1ef   :  { %83 = vpush %v65_v38 }
 0x220   :  { %s84_s18 = spop %83 }
 0x221   :  { %v67_v39 = vstv %s84_s18 }
 0x222   :  { %68 = vst [vmem:[#allocation4] sm:$0xff] %v67_v39 }
 0x223   :  { %106 = shalt.err (!%p103_p4)
}
 0x224   :  { %78 = dma.vmem_to_hbm [thread:$0]  %s76_s17, 128, %s158_s3, [#allocation5]  }
 0x225   :  { %115 = dma.done.wait [#allocation5], 128  }
 0x226   :  { %116 = vsyncadd [#allocation5], 4294967168 }
 0x227   :  { %82 = vsyncpa [#allocation5], 1 }

</bundles_post_ra>
